<compile_context>
chip_gen: v6e
topology: v6e:2x2x1
jax: 0.10.0
libtpu: 0.0.40
codegen_flags: <defaults>
</compile_context>

<pallas_src>
import jax
import jax.numpy as jnp
from jax import lax
from jax.experimental import pallas as pl
from jax.experimental.pallas import tpu as pltpu

# Small shapes consistent with forward(): bsz x seqlen token ids, hidden dim, vocab.
B, S, D, V = 2, 8, 32, 128
N = B * S                      # tokens per branch
N3 = 3 * N                     # anchor + plus + minus, batched
N4 = 4 * N                     # + labels row
MARGIN = 0.5
IGNORE_INDEX = -100


# ---------------------------------------------------------------------------
# Fused kernel: embedding lookup + encoder + tied LM head (plus branch only)
#               + cross-entropy + contrastive loss, all VMEM-resident.
# ---------------------------------------------------------------------------
def fused_forward_kernel(tokens_ref, margin_ref, slab_ref, blm_ref, out_ref):
    # --- unpack the packed parameter slab (static, aligned sublane slices) ---
    emb = slab_ref[0:V, :]                    # (V, D)  embedding table (tied head)
    w1 = slab_ref[V:V + D, :]                 # (D, D)
    b1 = slab_ref[V + D:V + D + 1, :]         # (1, D)

    # --- unpack packed tokens: [ids_a; ids_p; ids_m; labels] -----------------
    ids = tokens_ref[0:N3, :]                 # (3N, 1) i32
    labels = tokens_ref[N3:N4, :]             # (N, 1)  i32

    # --- embedding lookup for all three branches via one-hot MXU matmul ------
    vcol = lax.broadcasted_iota(jnp.int32, (N3, V), 1)
    onehot_ids = (vcol == ids).astype(jnp.float32)                # (3N, V)
    emb_x = jnp.dot(onehot_ids, emb, preferred_element_type=jnp.float32)  # (3N, D)

    # --- encoder: hidden = tanh(emb @ W1 + b1), all branches in one matmul ---
    h = jnp.tanh(jnp.dot(emb_x, w1, preferred_element_type=jnp.float32) + b1)
    h_a = h[0:N, :]                                               # anchor
    h_p = h[N:2 * N, :]                                           # plus
    h_m = h[2 * N:3 * N, :]                                       # minus

    # --- tied LM head only for the 'plus' branch: logits = h_p @ emb^T + blm -
    # dot_general contracts h_p's D axis against emb's D axis (MXU trans_b);
    # no transposed weight copy is ever materialized or DMA'd.
    logits_p = lax.dot_general(
        h_p, emb, dimension_numbers=(((1,), (1,)), ((), ())),
        preferred_element_type=jnp.float32) + blm_ref[...]        # (N, V)

    # --- cross entropy: ignore_index=-100, mean over valid tokens ------------
    m = jnp.max(logits_p, axis=-1, keepdims=True)
    lse = jnp.log(jnp.sum(jnp.exp(logits_p - m), axis=-1, keepdims=True)) + m
    lcol = lax.broadcasted_iota(jnp.int32, (N, V), 1)
    onehot_lab = (lcol == labels).astype(jnp.float32)
    picked = jnp.sum(logits_p * onehot_lab, axis=-1, keepdims=True)   # (N, 1)
    valid = (labels != IGNORE_INDEX).astype(jnp.float32)              # (N, 1)
    loss_sum = jnp.sum((lse - picked) * valid, keepdims=True)         # (1, 1)
    tok_cnt = jnp.sum(valid, keepdims=True)                           # (1, 1)
    mle = loss_sum * pl.reciprocal(tok_cnt, approx=False)             # (1, 1)

    # --- contrastive loss -----------------------------------------------------
    # cos_sim(h/||h||, h'/||h'||) == (h . h') / (||h|| ||h'||) for nonzero norms.
    # One stacked reduce: [h_a*h_p ; h_a*h_m ; h*h] -> (5N, D) -> (5N, 1).
    prods = jnp.concatenate([h_a * h_p, h_a * h_m, h * h], axis=0)    # (5N, D)
    dots = jnp.sum(prods, axis=-1, keepdims=True)                     # (5N, 1)
    d_p = dots[0:N, :]
    d_m = dots[N:2 * N, :]
    na2 = dots[2 * N:3 * N, :]
    np2 = dots[3 * N:4 * N, :]
    nm2 = dots[4 * N:5 * N, :]
    cos_p = d_p * lax.rsqrt(na2 * np2)                                # (N, 1)
    cos_m = d_m * lax.rsqrt(na2 * nm2)                                # (N, 1)

    margin = margin_ref[0]                                            # SMEM scalar
    loss = jnp.maximum(margin - (cos_p - cos_m), 0.0)
    cl = jnp.sum(loss, keepdims=True) * (1.0 / N)                     # (1, 1)

    # --- single lane-dense output: [mle, cl, 0, ...] --------------------------
    lane = lax.broadcasted_iota(jnp.int32, (1, 128), 1)
    out_ref[...] = jnp.where(lane == 0, mle, jnp.where(lane == 1, cl, 0.0))


def fused_forward(tokens, margin_arr, param_slab, blm):
    vmem = lambda: pl.BlockSpec(memory_space=pltpu.MemorySpace.VMEM)
    smem = lambda: pl.BlockSpec(memory_space=pltpu.MemorySpace.SMEM)
    return pl.pallas_call(
        fused_forward_kernel,
        out_shape=jax.ShapeDtypeStruct((1, 128), jnp.float32),
        in_specs=[vmem(),   # tokens      (4N, 1) i32
                  smem(),   # margin      (1,)    f32
                  vmem(),   # param slab  (V+D+1, D) f32
                  vmem()],  # blm         (1, V)  f32
        out_specs=vmem(),
    )(tokens, margin_arr, param_slab, blm)


# ---------------------------------------------------------------------------
# Parameter packing (done once, outside the per-call path)
# ---------------------------------------------------------------------------
def pack_params(emb_tbl, w1, b1, blm):
    # [emb_tbl (V,D) ; w1 (D,D) ; b1 (1,D)] -> (V+D+1, D); blm keeps (1,V) lane layout.
    slab = jnp.concatenate([emb_tbl, w1, b1], axis=0).astype(jnp.float32)
    return slab, blm.astype(jnp.float32)


# ---------------------------------------------------------------------------
# Forward wrapper (only trivial glue: pack the four token tensors + the margin)
# ---------------------------------------------------------------------------
def cl_pretraining_forward(packed_params, input_ids, input_ids_plus,
                           input_ids_minus, labels, margin):
    param_slab, blm = packed_params
    tokens = jnp.concatenate(
        [input_ids.reshape(-1), input_ids_plus.reshape(-1),
         input_ids_minus.reshape(-1), labels.reshape(-1)]
    ).astype(jnp.int32).reshape(N4, 1)
    margin_arr = jnp.asarray(margin, dtype=jnp.float32).reshape((1,))

    out = fused_forward(tokens, margin_arr, param_slab, blm)
    return out[0, 0], out[0, 1]


if __name__ == "__main__":
    key = jax.random.PRNGKey(0)
    k_emb, k_w1, k_ids, k_plus, k_minus, k_lab, k_ign = jax.random.split(key, 7)

    # Deterministic synthetic parameters (BertForMaskedLM stand-in, tied LM head).
    emb_tbl = (0.02 * jax.random.normal(k_emb, (V, D))).astype(jnp.float32)
    w1 = (0.02 * jax.random.normal(k_w1, (D, D))).astype(jnp.float32)
    b1 = jnp.zeros((1, D), jnp.float32)
    blm = jnp.zeros((1, V), jnp.float32)
    packed_params = pack_params(emb_tbl, w1, b1, blm)   # packed once, reused per call

    # Inputs: bsz x seqlen token ids; labels with some -100 (ignored) positions.
    input_ids = jax.random.randint(k_ids, (B, S), 0, V, dtype=jnp.int32)
    input_ids_plus = jax.random.randint(k_plus, (B, S), 0, V, dtype=jnp.int32)
    input_ids_minus = jax.random.randint(k_minus, (B, S), 0, V, dtype=jnp.int32)
    labels = jax.random.randint(k_lab, (B, S), 0, V, dtype=jnp.int32)
    ignore_mask = jax.random.bernoulli(k_ign, 0.25, (B, S))
    labels = jnp.where(ignore_mask, IGNORE_INDEX, labels)

    mle_loss, cl_loss = jax.jit(cl_pretraining_forward)(
        packed_params, input_ids, input_ids_plus, input_ids_minus, labels, MARGIN)
    jax.block_until_ready((mle_loss, cl_loss))
    print("KERNEL_OK")
</pallas_src>

<mosaic_0001>
module attributes {stable_mosaic.version = 11 : i64} {
  func.func @fused_forward_kernel(%arg0: memref<64x1xi32, #tpu.memory_space<vmem>>, %arg1: memref<1xf32, #tpu.memory_space<smem>>, %arg2: memref<161x32xf32, #tpu.memory_space<vmem>>, %arg3: memref<1x128xf32, #tpu.memory_space<vmem>>, %arg4: memref<1x128xf32, #tpu.memory_space<vmem>>) attributes {dimension_semantics = [], scalar_prefetch = 0 : i64, scratch_operands = 0 : i64, tpu.core_type = #tpu.core_type<tc>} {
    %c0 = arith.constant 0 : index
    %c0_0 = arith.constant 0 : index
    %0 = vector.load %arg2[%c0, %c0_0] : memref<161x32xf32, #tpu.memory_space<vmem>>, vector<128x32xf32>
    %c128 = arith.constant 128 : index
    %c0_1 = arith.constant 0 : index
    %1 = vector.load %arg2[%c128, %c0_1] : memref<161x32xf32, #tpu.memory_space<vmem>>, vector<32x32xf32>
    %c160 = arith.constant 160 : index
    %c0_2 = arith.constant 0 : index
    %2 = vector.load %arg2[%c160, %c0_2] : memref<161x32xf32, #tpu.memory_space<vmem>>, vector<1x32xf32>
    %c0_3 = arith.constant 0 : index
    %c0_4 = arith.constant 0 : index
    %3 = vector.load %arg0[%c0_3, %c0_4] : memref<64x1xi32, #tpu.memory_space<vmem>>, vector<48x1xi32>
    %c48 = arith.constant 48 : index
    %c0_5 = arith.constant 0 : index
    %4 = vector.load %arg0[%c48, %c0_5] : memref<64x1xi32, #tpu.memory_space<vmem>>, vector<16x1xi32>
    %5 = tpu.iota {dimensions = array<i32: 1>} : vector<48x128xi32>
    %6 = vector.broadcast %3 : vector<48x1xi32> to vector<48x128xi32>
    %7 = arith.cmpi eq, %5, %6 : vector<48x128xi32>
    %8 = arith.extui %7 : vector<48x128xi1> to vector<48x128xi32>
    %9 = arith.sitofp %8 : vector<48x128xi32> to vector<48x128xf32>
    %cst = arith.constant dense<0.000000e+00> : vector<48x32xf32>
    %10 = tpu.matmul %9, %0, %cst {dimension_numbers = #tpu.dot_dimension_numbers<[1], [0], [0], [1], [0, 0, 1, 1], [], []>} : vector<48x128xf32>, vector<128x32xf32>, vector<48x32xf32> -> vector<48x32xf32>
    %cst_6 = arith.constant dense<0.000000e+00> : vector<48x32xf32>
    %11 = tpu.matmul %10, %1, %cst_6 {dimension_numbers = #tpu.dot_dimension_numbers<[1], [0], [0], [1], [0, 0, 1, 1], [], []>} : vector<48x32xf32>, vector<32x32xf32>, vector<48x32xf32> -> vector<48x32xf32>
    %12 = vector.broadcast %2 : vector<1x32xf32> to vector<48x32xf32>
    %13 = arith.addf %11, %12 : vector<48x32xf32>
    %14 = math.tanh %13 : vector<48x32xf32>
    %15 = vector.extract_strided_slice %14 {offsets = [0, 0], sizes = [16, 32], strides = [1, 1]} : vector<48x32xf32> to vector<16x32xf32>
    %16 = vector.extract_strided_slice %14 {offsets = [16, 0], sizes = [16, 32], strides = [1, 1]} : vector<48x32xf32> to vector<16x32xf32>
    %17 = vector.extract_strided_slice %14 {offsets = [32, 0], sizes = [16, 32], strides = [1, 1]} : vector<48x32xf32> to vector<16x32xf32>
    %cst_7 = arith.constant dense<0.000000e+00> : vector<16x128xf32>
    %18 = tpu.matmul %16, %0, %cst_7 {dimension_numbers = #tpu.dot_dimension_numbers<[1], [1], [0], [0], [0, 0, 1, 0], [], []>} : vector<16x32xf32>, vector<128x32xf32>, vector<16x128xf32> -> vector<16x128xf32>
    %c0_8 = arith.constant 0 : index
    %c0_9 = arith.constant 0 : index
    %19 = vector.load %arg3[%c0_8, %c0_9] : memref<1x128xf32, #tpu.memory_space<vmem>>, vector<1x128xf32>
    %20 = vector.broadcast %19 : vector<1x128xf32> to vector<16x128xf32>
    %21 = arith.addf %18, %20 : vector<16x128xf32>
    %cst_10 = arith.constant dense<0xFF800000> : vector<16xf32>
    %22 = vector.multi_reduction <maximumf>, %21, %cst_10 [1] : vector<16x128xf32> to vector<16xf32>
    %23 = vector.shape_cast %22 : vector<16xf32> to vector<16x1xf32>
    %24 = vector.broadcast %23 : vector<16x1xf32> to vector<16x128xf32>
    %25 = arith.subf %21, %24 : vector<16x128xf32>
    %26 = math.exp %25 : vector<16x128xf32>
    %cst_11 = arith.constant dense<0.000000e+00> : vector<16xf32>
    %27 = vector.multi_reduction <add>, %26, %cst_11 [1] : vector<16x128xf32> to vector<16xf32>
    %28 = vector.shape_cast %27 : vector<16xf32> to vector<16x1xf32>
    %29 = math.log %28 : vector<16x1xf32>
    %30 = arith.addf %29, %23 : vector<16x1xf32>
    %31 = tpu.iota {dimensions = array<i32: 1>} : vector<16x128xi32>
    %32 = vector.broadcast %4 : vector<16x1xi32> to vector<16x128xi32>
    %33 = arith.cmpi eq, %31, %32 : vector<16x128xi32>
    %34 = arith.extui %33 : vector<16x128xi1> to vector<16x128xi32>
    %35 = arith.sitofp %34 : vector<16x128xi32> to vector<16x128xf32>
    %36 = arith.mulf %21, %35 : vector<16x128xf32>
    %cst_12 = arith.constant dense<0.000000e+00> : vector<16xf32>
    %37 = vector.multi_reduction <add>, %36, %cst_12 [1] : vector<16x128xf32> to vector<16xf32>
    %38 = vector.shape_cast %37 : vector<16xf32> to vector<16x1xf32>
    %c-100_i32 = arith.constant -100 : i32
    %39 = vector.broadcast %c-100_i32 : i32 to vector<16x1xi32>
    %40 = arith.cmpi ne, %4, %39 : vector<16x1xi32>
    %41 = arith.extui %40 : vector<16x1xi1> to vector<16x1xi32>
    %42 = arith.sitofp %41 : vector<16x1xi32> to vector<16x1xf32>
    %43 = arith.subf %30, %38 : vector<16x1xf32>
    %44 = arith.mulf %43, %42 : vector<16x1xf32>
    %45 = vector.shape_cast %44 : vector<16x1xf32> to vector<1x16x1xf32>
    %cst_13 = arith.constant dense<0.000000e+00> : vector<1xf32>
    %46 = vector.multi_reduction <add>, %45, %cst_13 [1, 2] : vector<1x16x1xf32> to vector<1xf32>
    %47 = vector.shape_cast %46 : vector<1xf32> to vector<1x1x1xf32>
    %48 = vector.extract %47[0, 0, 0] : f32 from vector<1x1x1xf32>
    %49 = vector.broadcast %48 : f32 to vector<1x1xf32>
    %50 = vector.shape_cast %42 : vector<16x1xf32> to vector<1x16x1xf32>
    %cst_14 = arith.constant dense<0.000000e+00> : vector<1xf32>
    %51 = vector.multi_reduction <add>, %50, %cst_14 [1, 2] : vector<1x16x1xf32> to vector<1xf32>
    %52 = vector.shape_cast %51 : vector<1xf32> to vector<1x1x1xf32>
    %53 = vector.extract %52[0, 0, 0] : f32 from vector<1x1x1xf32>
    %54 = vector.broadcast %53 : f32 to vector<1x1xf32>
    %55 = tpu.reciprocal %54 : vector<1x1xf32> -> vector<1x1xf32>
    %56 = arith.mulf %49, %55 : vector<1x1xf32>
    %57 = arith.mulf %15, %16 : vector<16x32xf32>
    %58 = arith.mulf %15, %17 : vector<16x32xf32>
    %59 = arith.mulf %14, %14 : vector<48x32xf32>
    %60 = tpu.concatenate %57, %58, %59 in 0 : vector<16x32xf32>, vector<16x32xf32>, vector<48x32xf32> -> vector<80x32xf32>
    %cst_15 = arith.constant dense<0.000000e+00> : vector<80xf32>
    %61 = vector.multi_reduction <add>, %60, %cst_15 [1] : vector<80x32xf32> to vector<80xf32>
    %62 = vector.shape_cast %61 : vector<80xf32> to vector<80x1xf32>
    %63 = vector.extract_strided_slice %62 {offsets = [0, 0], sizes = [16, 1], strides = [1, 1]} : vector<80x1xf32> to vector<16x1xf32>
    %64 = vector.extract_strided_slice %62 {offsets = [16, 0], sizes = [16, 1], strides = [1, 1]} : vector<80x1xf32> to vector<16x1xf32>
    %65 = vector.extract_strided_slice %62 {offsets = [32, 0], sizes = [16, 1], strides = [1, 1]} : vector<80x1xf32> to vector<16x1xf32>
    %66 = vector.extract_strided_slice %62 {offsets = [48, 0], sizes = [16, 1], strides = [1, 1]} : vector<80x1xf32> to vector<16x1xf32>
    %67 = vector.extract_strided_slice %62 {offsets = [64, 0], sizes = [16, 1], strides = [1, 1]} : vector<80x1xf32> to vector<16x1xf32>
    %68 = arith.mulf %65, %66 : vector<16x1xf32>
    %69 = math.rsqrt %68 : vector<16x1xf32>
    %70 = arith.mulf %63, %69 : vector<16x1xf32>
    %71 = arith.mulf %65, %67 : vector<16x1xf32>
    %72 = math.rsqrt %71 : vector<16x1xf32>
    %73 = arith.mulf %64, %72 : vector<16x1xf32>
    %c0_16 = arith.constant 0 : index
    %74 = memref.load %arg1[%c0_16] : memref<1xf32, #tpu.memory_space<smem>>
    %75 = arith.subf %70, %73 : vector<16x1xf32>
    %76 = vector.broadcast %74 : f32 to vector<16x1xf32>
    %77 = arith.subf %76, %75 : vector<16x1xf32>
    %cst_17 = arith.constant 0.000000e+00 : f32
    %78 = vector.broadcast %cst_17 : f32 to vector<16x1xf32>
    %79 = arith.maximumf %77, %78 : vector<16x1xf32>
    %80 = vector.shape_cast %79 : vector<16x1xf32> to vector<1x16x1xf32>
    %cst_18 = arith.constant dense<0.000000e+00> : vector<1xf32>
    %81 = vector.multi_reduction <add>, %80, %cst_18 [1, 2] : vector<1x16x1xf32> to vector<1xf32>
    %82 = vector.shape_cast %81 : vector<1xf32> to vector<1x1x1xf32>
    %83 = vector.extract %82[0, 0, 0] : f32 from vector<1x1x1xf32>
    %84 = vector.broadcast %83 : f32 to vector<1x1xf32>
    %cst_19 = arith.constant 6.250000e-02 : f32
    %85 = vector.broadcast %cst_19 : f32 to vector<1x1xf32>
    %86 = arith.mulf %84, %85 : vector<1x1xf32>
    %87 = tpu.iota {dimensions = array<i32: 1>} : vector<1x128xi32>
    %c0_i32 = arith.constant 0 : i32
    %88 = vector.broadcast %c0_i32 : i32 to vector<1x128xi32>
    %89 = arith.cmpi eq, %87, %88 : vector<1x128xi32>
    %c1_i32 = arith.constant 1 : i32
    %90 = vector.broadcast %c1_i32 : i32 to vector<1x128xi32>
    %91 = arith.cmpi eq, %87, %90 : vector<1x128xi32>
    %cst_20 = arith.constant 0.000000e+00 : f32
    %92 = vector.shape_cast %86 : vector<1x1xf32> to vector<1x1xf32>
    %93 = vector.broadcast %92 : vector<1x1xf32> to vector<1x128xf32>
    %94 = vector.broadcast %cst_20 : f32 to vector<1x128xf32>
    %95 = arith.select %91, %93, %94 : vector<1x128xi1>, vector<1x128xf32>
    %96 = vector.shape_cast %56 : vector<1x1xf32> to vector<1x1xf32>
    %97 = vector.broadcast %96 : vector<1x1xf32> to vector<1x128xf32>
    %98 = arith.select %89, %97, %95 : vector<1x128xi1>, vector<1x128xf32>
    %c0_21 = arith.constant 0 : index
    %c0_22 = arith.constant 0 : index
    %99 = vector.load %arg4[%c0_21, %c0_22] : memref<1x128xf32, #tpu.memory_space<vmem>>, vector<1x128xf32>
    tpu.vector_store %arg4[%c0_21, %c0_22], %98 {strides = array<i32>} : memref<1x128xf32, #tpu.memory_space<vmem>>, vector<1x128xf32>,
    return
  }
}

</mosaic_0001>

<bundles_post_ra>
// kernel: cl_pretraining_forward.1
= control target key start
LH: loop header
LB: loop body
LE: loop exit
PB: predicated region body
PF: predicated region fallthrough
CT: control target
= control target key end

     0   :  { %v826_v0 = vmov 0   ;;  %v47_v24 = vlaneseq  ;;  %v827_v28 = vmov 1.0   ;;  %vm184_vm6 = vcmask 261120   ;;  %s1128_s0 = inlined_call_operand.vmem [shape: s32[64,1], index: 0, kind: input, shape index: {}]   ;;  %s1129_s2 = inlined_call_operand.vmem [shape: f32[161,32], index: 2, kind: input, shape index: {}]   ;;  %s1130_s3 = inlined_call_operand.vmem [shape: f32[1,128], index: 3, kind: input, shape index: {}]   ;;  %s1131_s1 = inlined_call_operand.<no memory space> [shape: f32[1], index: 1, kind: input, shape index: {}]   ;;  %s1132_s4 = inlined_call_operand.vmem [shape: f32[1,128], index: 4, kind: output, shape index: {}]  }
   0x1   :  { %795 = vset.pattern.permute.xlu1 %v826_v0  ;;  %794 = vset.pattern.permute.xlu0 %v826_v0  ;;  %v41_v1 = vld [vmem:[%s1128_s0 + $0x10] sm:$0xff]  ;;  %v39_v2 = vld [vmem:[%s1128_s0] sm:$0xff]  ;;  %v42_v3 = vld [vmem:[%s1128_s0 + $0x18] sm:$0xff]  ;;  %vm488_vm11 = vcmask 7168  }
   0x2   :  { %56 = vperm.xlu1 %795, %v41_v1   ;;  %50 = vperm.xlu0 %794, %v39_v2   ;;  %v40_v4 = vld [vmem:[%s1128_s0 + $0x8] sm:$0xff]  ;;  %v869_v5 = vld [vmem:[%s1129_s2 + $0x78] sm:$0xff]  ;;  %v875_v6 = vld [vmem:[%s1129_s2 + $0x70] sm:$0xff]  ;;  %v987_v25 = vand.u32 127, %v47_v24 }
   0x3   :  { %692 = vmatprep.subr.mxu0 %v869_v5  ;;  %v881_v7 = vld [vmem:[%s1129_s2 + $0x68] sm:$0xff]  ;;  %v43_v9 = vld [vmem:[%s1128_s0 + $0x20] sm:$0xff]  ;;  %v901_v11 = vld [vmem:[%s1129_s2 + $0x58] sm:$0xff]  ;;  %750 = vmatprep.subr.msk.mxu1 %vm184_vm6, %v869_v5 }
   0x4   :  { %693 = vmatpush3.msra.mxu0 %v869_v5  ;;  %v44_v8 = vld [vmem:[%s1128_s0 + $0x28] sm:$0xff]  ;;  %v895_v10 = vld [vmem:[%s1129_s2 + $0x60] sm:$0xff]  ;;  %v908_v12 = vld [vmem:[%s1129_s2 + $0x50] sm:$0xff]  ;;  %751 = vmatpush3.xpose.msk.msra.mxu1 %vm184_vm6, %v869_v5  ;;  %vm592_vm12 = vcmp.eq.s32.totalorder %v987_v25, 1  ;;  %vm591_vm13 = vcmp.eq.s32.totalorder %v987_v25, 0 }
   0x5   :  { %694 = vmatprep.subr.mxu0 %v875_v6  ;;  %v915_v13 = vld [vmem:[%s1129_s2 + $0x48] sm:$0xff]  ;;  %v922_v14 = vld [vmem:[%s1129_s2 + $0x40] sm:$0xff]  ;;  %v929_v15 = vld [vmem:[%s1129_s2 + $0x38] sm:$0xff]  ;;  %752 = vmatprep.subr.msk.mxu1 %vm184_vm6, %v875_v6 }
   0x6   :  { %59 = vperm.xlu1 %795, %v42_v3   ;;  %53 = vperm.xlu0 %794, %v40_v4   ;;  %v936_v16 = vld [vmem:[%s1129_s2 + $0x30] sm:$0xff]  ;;  %v943_v17 = vld [vmem:[%s1129_s2 + $0x28] sm:$0xff]  ;;  %v950_v18 = vld [vmem:[%s1129_s2 + $0x20] sm:$0xff] }
   0x7   :  { %695 = vmatpush3.msra.mxu0 %v875_v6  ;;  %v957_v19 = vld [vmem:[%s1129_s2 + $0x18] sm:$0xff]  ;;  %v964_v20 = vld [vmem:[%s1129_s2 + $0x10] sm:$0xff]  ;;  %v971_v21 = vld [vmem:[%s1129_s2 + $0x8] sm:$0xff] }
   0x8   :  { %696 = vmatprep.subr.mxu0 %v881_v7  ;;  %v978_v22 = vld [vmem:[%s1129_s2] sm:$0xff]  ;;  %v37_v23 = vld [vmem:[%s1129_s2 + $0x98] sm:$0xff]  ;;  %v36_v31 = vld [vmem:[%s1129_s2 + $0x90] sm:$0xff]  ;;  %753 = vmatpush3.xpose.msk.msra.mxu1 %vm184_vm6, %v875_v6 }
   0x9   :  { %697 = vmatpush3.msra.mxu0 %v881_v7  ;;  %v35_v32 = vld [vmem:[%s1129_s2 + $0x88] sm:$0xff]  ;;  %v34_v35 = vld [vmem:[%s1129_s2 + $0x80] sm:$0xff]  ;;  %754 = vmatprep.subr.msk.mxu1 %vm184_vm6, %v881_v7  ;;  %v46_v6 = vld [vmem:[%s1128_s0 + $0x38] sm:$0xff] }
   0xa   :  { %65 = vperm.xlu1 %795, %v44_v8   ;;  %62 = vperm.xlu0 %794, %v43_v9   ;;  %v612_v42 = vld [vmem:[%s1129_s2 + $0xa0] ss:$0 sm:$0xff]  ;;  %vm479_vm10 = vcmp.ne.s32.totalorder %v46_v6, 4294967196 }
   0xb   :  { %698 = vmatprep.subr.mxu0 %v895_v10  ;;  %v619_v1 = vld [vmem:[%s1130_s3] ss:$0 sm:$0xff] }
   0xc   :  { %699 = vmatpush3.msra.mxu0 %v895_v10  ;;  %755 = vmatpush3.xpose.msk.msra.mxu1 %vm184_vm6, %v881_v7  ;;  %v45_v7 = vld [vmem:[%s1128_s0 + $0x30] sm:$0xff] }
   0xd   :  { %700 = vmatprep.subr.mxu0 %v901_v11  ;;  %756 = vmatprep.subr.msk.mxu1 %vm184_vm6, %v895_v10  ;;  %vm478_vm9 = vcmp.ne.s32.totalorder %v45_v7, 4294967196 }
   0xe   :  { %701 = vmatpush3.msra.mxu0 %v901_v11 }
   0xf   :  { %702 = vmatprep.subr.mxu0 %v908_v12 }
  0x10   :  { %703 = vmatpush3.msra.mxu0 %v908_v12  ;;  %757 = vmatpush3.xpose.msk.msra.mxu1 %vm184_vm6, %v895_v10 }
  0x11   :  { %704 = vmatprep.subr.mxu0 %v915_v13  ;;  %758 = vmatprep.subr.msk.mxu1 %vm184_vm6, %v901_v11 }
  0x12   :  { %705 = vmatpush3.msra.mxu0 %v915_v13 }
  0x13   :  { %706 = vmatprep.subr.mxu0 %v922_v14 }
  0x14   :  { %707 = vmatpush3.msra.mxu0 %v922_v14  ;;  %759 = vmatpush3.xpose.msk.msra.mxu1 %vm184_vm6, %v901_v11 }
  0x15   :  { %708 = vmatprep.subr.mxu0 %v929_v15  ;;  %760 = vmatprep.subr.msk.mxu1 %vm184_vm6, %v908_v12 }
  0x16   :  { %709 = vmatpush3.msra.mxu0 %v929_v15 }
  0x17   :  { %710 = vmatprep.subr.mxu0 %v936_v16 }
  0x18   :  { %711 = vmatpush3.msra.mxu0 %v936_v16  ;;  %761 = vmatpush3.xpose.msk.msra.mxu1 %vm184_vm6, %v908_v12 }
  0x19   :  { %712 = vmatprep.subr.mxu0 %v943_v17  ;;  %762 = vmatprep.subr.msk.mxu1 %vm184_vm6, %v915_v13 }
  0x1a   :  { %713 = vmatpush3.msra.mxu0 %v943_v17 }
  0x1b   :  { %714 = vmatprep.subr.mxu0 %v950_v18 }
  0x1c   :  { %715 = vmatpush3.msra.mxu0 %v950_v18  ;;  %763 = vmatpush3.xpose.msk.msra.mxu1 %vm184_vm6, %v915_v13 }
  0x1d   :  { %716 = vmatprep.subr.mxu0 %v957_v19  ;;  %764 = vmatprep.subr.msk.mxu1 %vm184_vm6, %v922_v14 }
  0x1e   :  { %717 = vmatpush3.msra.mxu0 %v957_v19 }
  0x1f   :  { %718 = vmatprep.subr.mxu0 %v964_v20 }
  0x20   :  { %719 = vmatpush3.msra.mxu0 %v964_v20  ;;  %765 = vmatpush3.xpose.msk.msra.mxu1 %vm184_vm6, %v922_v14 }
  0x21   :  { %720 = vmatprep.subr.mxu0 %v971_v21  ;;  %766 = vmatprep.subr.msk.mxu1 %vm184_vm6, %v929_v15 }
  0x22   :  { %721 = vmatpush3.msra.mxu0 %v971_v21 }
  0x23   :  { %722 = vmatprep.subr.mxu0 %v978_v22 }
  0x24   :  { %723 = vmatpush3.msra.mxu0 %v978_v22  ;;  %767 = vmatpush3.xpose.msk.msra.mxu1 %vm184_vm6, %v929_v15 }
  0x25   :  { %733 = vmatprep.subr.mxu0 %v37_v23  ;;  %768 = vmatprep.subr.msk.mxu1 %vm184_vm6, %v936_v16 }
  0x28   :  { %769 = vmatpush3.xpose.msk.msra.mxu1 %vm184_vm6, %v936_v16 }
  0x29   :  { %770 = vmatprep.subr.msk.mxu1 %vm184_vm6, %v943_v17 }
  0x2c   :  { %771 = vmatpush3.xpose.msk.msra.mxu1 %vm184_vm6, %v943_v17 }
  0x2d   :  { %772 = vmatprep.subr.msk.mxu1 %vm184_vm6, %v950_v18 }
  0x30   :  { %773 = vmatpush3.xpose.msk.msra.mxu1 %vm184_vm6, %v950_v18 }
  0x31   :  { %774 = vmatprep.subr.msk.mxu1 %vm184_vm6, %v957_v19 }
  0x34   :  { %775 = vmatpush3.xpose.msk.msra.mxu1 %vm184_vm6, %v957_v19 }
  0x35   :  { %776 = vmatprep.subr.msk.mxu1 %vm184_vm6, %v964_v20 }
  0x38   :  { %777 = vmatpush3.xpose.msk.msra.mxu1 %vm184_vm6, %v964_v20 }
  0x39   :  { %778 = vmatprep.subr.msk.mxu1 %vm184_vm6, %v971_v21 }
  0x3c   :  { %779 = vmatpush3.xpose.msk.msra.mxu1 %vm184_vm6, %v971_v21 }
  0x3d   :  { %780 = vmatprep.subr.msk.mxu1 %vm184_vm6, %v978_v22 }
  0x40   :  { %781 = vmatpush3.xpose.msk.msra.mxu1 %vm184_vm6, %v978_v22 }
  0x7d   :  { %v57_v26 = vpop.permute.xlu1 %56  ;;  %v51_v27 = vpop.permute.xlu0 %50 }
  0x7e   :  { %vm67_vm0 = vcmp.eq.s32.totalorder %v987_v25, %v51_v27  ;;  %vm69_vm1 = vcmp.eq.s32.totalorder %v987_v25, %v57_v26  ;;  %v828_v27 = vmov 0.0  }
  0x7f   :  { %724 = vmatprep.mubr.msk.f32.mxu0 %vm67_vm0, %v827_v28 }
  0x81   :  { %v60_v29 = vpop.permute.xlu1 %59  ;;  %v54_v30 = vpop.permute.xlu0 %53 }
  0x82   :  { %vm68_vm2 = vcmp.eq.s32.totalorder %v987_v25, %v54_v30  ;;  %vm70_vm3 = vcmp.eq.s32.totalorder %v987_v25, %v60_v29 }
  0x83   :  { %725 = vmatmul.mubr.msk.f32.vlgmr.msra.gmra.mxu0 %vm68_vm2, %v827_v28 }
  0x84   :  { %727 = vmatprep.mubr.msk.f32.mxu0 %vm69_vm1, %v827_v28  ;;  %734 = vmatpush3.msra.mxu0 %v37_v23 }
  0x85   :  { %v63_v33 = vpop.permute.xlu0 %62  ;;  %735 = vmatprep.subr.mxu0 %v36_v31  ;;  %v66_v34 = vpop.permute.xlu1 %65 }
  0x86   :  { %vm71_vm4 = vcmp.eq.s32.totalorder %v987_v25, %v63_v33  ;;  %736 = vmatpush3.msra.mxu0 %v36_v31  ;;  %vm72_vm5 = vcmp.eq.s32.totalorder %v987_v25, %v66_v34 }
  0x87   :  { %728 = vmatmul.mubr.msk.f32.gmra.mxu0 %vm70_vm3, %v827_v28  ;;  %737 = vmatprep.subr.mxu0 %v35_v32 }
  0x88   :  { %730 = vmatprep.mubr.msk.f32.mxu0 %vm71_vm4, %v827_v28  ;;  %738 = vmatpush3.msra.mxu0 %v35_v32 }
  0x89   :  { %739 = vmatprep.subr.mxu0 %v34_v35 }
  0x8a   :  { %740 = vmatpush3.msra.mxu0 %v34_v35 }
  0x8b   :  { %731 = vmatmul.mubr.msk.f32.gmra.mxu0 %vm72_vm5, %v827_v28 }
 0x143   :  { %v726_v36 = vpop.f32.mrf.mxu0 }
 0x145   :  { %v151_v37 = vpop.f32.mrf.mxu0 }
 0x146   :  { %741 = vmatprep.mubr.msk.f32.mxu0 %vm184_vm6, %v151_v37 }
 0x147   :  { %v729_v38 = vpop.f32.mrf.mxu0  ;;  %742 = vmatmul.mubr.msk.f32.vlgmr.msra.gmra.mxu0 %vm184_vm6, %v726_v36 }
 0x149   :  { %v161_v39 = vpop.f32.mrf.mxu0 }
 0x14a   :  { %744 = vmatprep.mubr.msk.f32.mxu0 %vm184_vm6, %v161_v39 }
 0x14b   :  { %v732_v40 = vpop.f32.mrf.mxu0  ;;  %745 = vmatmul.mubr.msk.f32.gmra.mxu0 %vm184_vm6, %v729_v38 }
 0x14d   :  { %v171_v41 = vpop.f32.mrf.mxu0 }
 0x14e   :  { %747 = vmatprep.mubr.msk.f32.mxu0 %vm184_vm6, %v171_v41  ;;  %v641_v41 = vsel %vm479_vm10, 1.0, %v828_v27 }
 0x14f   :  { %748 = vmatmul.mubr.msk.f32.gmra.mxu0 %vm184_vm6, %v732_v40  ;;  %v640_v40 = vsel %vm478_vm9, 1.0, %v828_v27 }
 0x207   :  { %v743_v43 = vpop.f32.mrf.mxu0 }
 0x208   :  { %v275_v44 = vadd.f32 %v743_v43, %v612_v42  ;;  %v503_v43 = vsel %vm488_vm11, %v641_v41, 0.0 }
 0x209   :  { %v269_v45 = vpop.f32.mrf.mxu0 }
 0x20a   :  { %v270_v46 = vadd.f32 %v612_v42, %v269_v45  ;;  %796 = vtanh.f32 %v275_v44 }
 0x20b   :  { %v746_v47 = vpop.f32.mrf.mxu0 }
 0x20c   :  { %v285_v48 = vadd.f32 %v746_v47, %v612_v42 }
 0x20d   :  { %v279_v49 = vpop.f32.mrf.mxu0 }
 0x20e   :  { %798 = vtanh.f32 %v285_v48  ;;  %v280_v50 = vadd.f32 %v612_v42, %v279_v49 }
 0x20f   :  { %800 = vtanh.f32 %v270_v46  ;;  %v749_v51 = vpop.f32.mrf.mxu0 }
 0x210   :  { %802 = vtanh.f32 %v280_v50  ;;  %v295_v52 = vadd.f32 %v749_v51, %v612_v42 }
 0x211   :  { %v289_v53 = vpop.f32.mrf.mxu0 }
 0x212   :  { %804 = vtanh.f32 %v295_v52  ;;  %v290_v54 = vadd.f32 %v612_v42, %v289_v53  ;;  %v502_v42 = vsel %vm488_vm11, %v640_v40, 0.0 }
 0x213   :  { %v504_v44 = vadd.f32 %v503_v43, %v502_v42 }
 0x214   :  { %806 = vtanh.f32 %v290_v54 }
 0x217   :  { %v797_v55 = vpop.eup %796 }
 0x218   :  { %v522_v20 = vmul.f32 %v797_v55, %v797_v55 }
 0x21a   :  { %v542_v23 = vsel %vm184_vm6, %v522_v20, 0.0 }
 0x21b   :  { %v799_v56 = vpop.eup %798 }
 0x21c   :  { %v801_v57 = vpop.eup %800  ;;  %v1077_v58 = vmul.f32 %v799_v56, %v797_v55  ;;  %v524_v24 = vmul.f32 %v799_v56, %v799_v56 }
 0x21d   :  { %v803_v59 = vpop.eup %802  ;;  %v521_v8 = vmul.f32 %v801_v57, %v801_v57 }
 0x21e   :  { %782 = vmatprep.mubr.msk.f32.mxu1 %vm184_vm6, %v803_v59  ;;  %v517_v60 = vmul.f32 %v803_v59, %v801_v57  ;;  %v523_v17 = vmul.f32 %v803_v59, %v803_v59  ;;  %v548_v30 = vsel %vm184_vm6, %v524_v24, 0.0  ;;  %v530_v38 = vsel %vm184_vm6, %v1077_v58, 0.0 }
 0x21f   :  { %v805_v61 = vpop.eup %804  ;;  %783 = vmatmul.mubr.msk.f32.vlgmr.msra.gmra.mxu1 %vm184_vm6, %v799_v56  ;;  %v539_v9 = vsel %vm184_vm6, %v521_v8, 0.0 }
 0x220   :  { %v1081_v62 = vmul.f32 %v805_v61, %v797_v55  ;;  %v545_v21 = vsel %vm184_vm6, %v523_v17, 0.0  ;;  %v526_v31 = vmul.f32 %v805_v61, %v805_v61  ;;  %v527_v35 = vsel %vm184_vm6, %v517_v60, 0.0 }
 0x221   :  { %v807_v63 = vpop.eup %806 }
 0x222   :  { %v519_v0 = vmul.f32 %v807_v63, %v801_v57  ;;  %v525_v22 = vmul.f32 %v807_v63, %v807_v63  ;;  %v554_v34 = vsel %vm184_vm6, %v526_v31, 0.0  ;;  %v536_v39 = vsel %vm184_vm6, %v1081_v62, 0.0 }
 0x224   :  { %v551_v29 = vsel %vm184_vm6, %v525_v22, 0.0  ;;  %v533_v37 = vsel %vm184_vm6, %v519_v0, 0.0 }
 0x2df   :  { %v784_v2 = vpop.f32.mrf.mxu1 }
 0x2e0   :  { %v437_v3 = vadd.f32 %v784_v2, %v619_v1 }
 0x2e1   :  { %v431_v4 = vpop.f32.mrf.mxu1 }
 0x2e2   :  { %v432_v5 = vadd.f32 %v619_v1, %v431_v4  ;;  %442 = vmax.xlane.f32.xlu1 %v437_v3 }
 0x2e4   :  { %440 = vmax.xlane.f32.xlu0 %v432_v5 }
 0x2f3   :  { %464 = vperm.xlu1 %795, %v46_v6  }
 0x2fa   :  { %461 = vperm.xlu0 %794, %v45_v7  }
 0x319   :  { %540 = vadd.xlane.f32.xlu0 %v539_v9 }
 0x36b   :  { %v1093_v10 = vpop.xlane.xlu1 %442 }
 0x36c   :  { %v445_v11 = vsub.f32 %v437_v3, %v1093_v10 }
 0x36d   :  { %v1096_v12 = vpop.xlane.xlu0 %440 }
 0x36e   :  { %v448_v13 = vmul.f32 1.442695, %v445_v11  ;;  %v444_v14 = vsub.f32 %v432_v5, %v1096_v12 }
 0x36f   :  { %v465_v26 = vpop.permute.xlu1 %464 }
 0x370   :  { %808 = vpow2.f32 %v448_v13  ;;  %v446_v15 = vmul.f32 1.442695, %v444_v14  ;;  %vm467_vm8 = vcmp.eq.s32.totalorder %v987_v25, %v465_v26 }
 0x371   :  { %v639_v33 = vsel %vm467_vm8, 1.0, %v828_v27 }
 0x372   :  { %810 = vpow2.f32 %v446_v15  ;;  %v473_v36 = vmul.f32 %v639_v33, %v437_v3 }
 0x375   :  { %v462_v19 = vpop.permute.xlu0 %461 }
 0x376   :  { %vm466_vm7 = vcmp.eq.s32.totalorder %v987_v25, %v462_v19 }
 0x377   :  { %v638_v28 = vsel %vm466_vm7, 1.0, %v828_v27 }
 0x378   :  { %v472_v32 = vmul.f32 %v638_v28, %v432_v5 }
 0x37d   :  { %v809_v16 = vpop.eup %808 }
 0x37e   :  { %452 = vadd.xlane.f32.xlu1 %v809_v16 }
 0x37f   :  { %v811_v18 = vpop.eup %810 }
 0x380   :  { %450 = vadd.xlane.f32.xlu0 %v811_v18 }
 0x382   :  { %546 = vadd.xlane.f32.xlu1 %v545_v21 }
 0x384   :  { %543 = vadd.xlane.f32.xlu0 %v542_v23 }
 0x386   :  { %552 = vadd.xlane.f32.xlu1 %v551_v29 }
 0x388   :  { %549 = vadd.xlane.f32.xlu0 %v548_v30 }
 0x38a   :  { %474 = vadd.xlane.f32.xlu1 %v472_v32 }
 0x38c   :  { %555 = vadd.xlane.f32.xlu0 %v554_v34 }
 0x38e   :  { %528 = vadd.xlane.f32.xlu1 %v527_v35 }
 0x390   :  { %476 = vadd.xlane.f32.xlu0 %v473_v36 }
 0x392   :  { %534 = vadd.xlane.f32.xlu1 %v533_v37 }
 0x394   :  { %531 = vadd.xlane.f32.xlu0 %v530_v38 }
 0x398   :  { %537 = vadd.xlane.f32.xlu0 %v536_v39 }
 0x39c   :  { %505 = vadd.xlane.f32.xlu0 %v504_v44 }
 0x3a2   :  { %v541_v45 = vpop.xlane.xlu0 %540 }
 0x407   :  { %v453_v46 = vpop.xlane.xlu1 %452 }
 0x408   :  { %812 = vlog2.f32 %v453_v46 }
 0x409   :  { %v451_v47 = vpop.xlane.xlu0 %450 }
 0x40a   :  { %814 = vlog2.f32 %v451_v47 }
 0x40b   :  { %v547_v48 = vpop.xlane.xlu1 %546 }
 0x40c   :  { %v557_v49 = vmul.f32 %v547_v48, %v541_v45 }
 0x40d   :  { %v544_v50 = vpop.xlane.xlu0 %543 }
 0x40e   :  { %816 = vrsqrt.f32 %v557_v49 }
 0x40f   :  { %v553_v51 = vpop.xlane.xlu1 %552 }
 0x410   :  { %v563_v52 = vmul.f32 %v553_v51, %v541_v45 }
 0x411   :  { %v550_v53 = vpop.xlane.xlu0 %549 }
 0x412   :  { %818 = vrsqrt.f32 %v563_v52  ;;  %v558_v54 = vmul.f32 %v550_v53, %v544_v50 }
 0x413   :  { %v475_v55 = vpop.xlane.xlu1 %474 }
 0x414   :  { %820 = vrsqrt.f32 %v558_v54 }
 0x415   :  { %v813_v56 = vpop.eup %812  ;;  %v556_v57 = vpop.xlane.xlu0 %555 }
 0x416   :  { %v457_v58 = vmul.f32 0.6931472, %v813_v56  ;;  %v564_v59 = vmul.f32 %v556_v57, %v544_v50 }
 0x417   :  { %v815_v60 = vpop.eup %814  ;;  %v529_v63 = vpop.xlane.xlu1 %528 }
 0x418   :  { %v455_v61 = vmul.f32 0.6931472, %v815_v60  ;;  %822 = vrsqrt.f32 %v564_v59  ;;  %v459_v62 = vadd.f32 %v457_v58, %v1093_v10 }
 0x419   :  { %v477_v0 = vpop.xlane.xlu0 %476 }
 0x41a   :  { %v458_v1 = vadd.f32 %v455_v61, %v1096_v12  ;;  %v485_v2 = vsub.f32 %v459_v62, %v477_v0  ;;  %v572_v12 = vstv %s1131_s1 }
 0x41b   :  { %v817_v5 = vpop.eup %816  ;;  %v535_v8 = vpop.xlane.xlu1 %534 }
 0x41c   :  { %v484_v3 = vsub.f32 %v458_v1, %v475_v55  ;;  %v487_v4 = vmul.f32 %v641_v41, %v485_v2  ;;  %v561_v11 = vmul.f32 %v817_v5, %v529_v63 }
 0x41d   :  { %v532_v9 = vpop.xlane.xlu0 %531 }
 0x41e   :  { %v486_v6 = vmul.f32 %v640_v40, %v484_v3  ;;  %v490_v15 = vsel %vm488_vm11, %v487_v4, 0.0 }
 0x41f   :  { %v819_v7 = vpop.eup %818 }
 0x420   :  { %v567_v13 = vmul.f32 %v819_v7, %v535_v8  ;;  %v489_v14 = vsel %vm488_vm11, %v486_v6, 0.0 }
 0x421   :  { %v491_v16 = vadd.f32 %v490_v15, %v489_v14  ;;  %v821_v17 = vpop.eup %820  ;;  %v538_v19 = vpop.xlane.xlu0 %537 }
 0x422   :  { %v570_v10 = vsub.f32 %v561_v11, %v567_v13  ;;  %v562_v21 = vmul.f32 %v821_v17, %v532_v9 }
 0x423   :  { %492 = vadd.xlane.f32.xlu1 %v491_v16 }
 0x424   :  { %v573_v20 = vsub.f32 %v572_v12, %v570_v10 }
 0x425   :  { %v823_v18 = vpop.eup %822  ;;  %v506_v31 = vpop.xlane.xlu0 %505 }
 0x426   :  { %v568_v22 = vmul.f32 %v823_v18, %v538_v19  ;;  %v575_v26 = vmax.f32 %v573_v20, 0.0  ;;  %v507_v32 = vrot.slane %v506_v31, 4 }
 0x428   :  { %v571_v23 = vsub.f32 %v562_v21, %v568_v22  ;;  %v577_v28 = vsel %vm488_vm11, %v575_v26, 0.0  ;;  %v508_v33 = vadd.f32 %v507_v32, %v506_v31 }
 0x42a   :  { %v574_v24 = vsub.f32 %v572_v12, %v571_v23  ;;  %v509_v34 = vrot.slane %v508_v33, 2 }
 0x42c   :  { %v576_v27 = vmax.f32 %v574_v24, 0.0  ;;  %v510_v38 = vadd.f32 %v509_v34, %v508_v33 }
 0x42e   :  { %v578_v29 = vsel %vm488_vm11, %v576_v27, 0.0  ;;  %v511_v41 = vrot.slane %v510_v38, 1 }
 0x42f   :  { %v579_v30 = vadd.f32 %v578_v29, %v577_v28 }
 0x430   :  { %v512_v44 = vadd.f32 %v511_v41, %v510_v38 }
 0x431   :  { %580 = vadd.xlane.f32.xlu1 %v579_v30 }
 0x4ac   :  { %v493_v35 = vpop.xlane.xlu1 %492 }
 0x4ad   :  { %v494_v36 = vrot.slane %v493_v35, 4 }
 0x4af   :  { %v495_v37 = vadd.f32 %v494_v36, %v493_v35 }
 0x4b1   :  { %v496_v39 = vrot.slane %v495_v37, 2 }
 0x4b3   :  { %v497_v40 = vadd.f32 %v496_v39, %v495_v37 }
 0x4b5   :  { %v498_v42 = vrot.slane %v497_v40, 1 }
 0x4b7   :  { %v499_v43 = vadd.f32 %v498_v42, %v497_v40 }
 0x4b9   :  { %785 = vpush %v499_v43 }
 0x4ba   :  { %787 = vpush %v512_v44  ;;  %v581_v45 = vpop.xlane.xlu1 %580 }
 0x4bb   :  { %v582_v46 = vrot.slane %v581_v45, 4 }
 0x4bd   :  { %v583_v47 = vadd.f32 %v582_v46, %v581_v45 }
 0x4bf   :  { %v584_v48 = vrot.slane %v583_v47, 2 }
 0x4c1   :  { %v585_v49 = vadd.f32 %v584_v48, %v583_v47 }
 0x4c3   :  { %v586_v50 = vrot.slane %v585_v49, 1 }
 0x4c5   :  { %v587_v51 = vadd.f32 %v586_v50, %v585_v49 }
 0x4c7   :  { %789 = vpush %v587_v51 }
 0x4ea   :  { %s786_s1 = spop %785 }
 0x4eb   :  { %s788_s22 = spop %787  ;;  %v501_v55 = vstv %s786_s1 }
 0x4ec   :  { %v514_v52 = vstv %s788_s22 }
 0x4ed   :  { %824 = vrcp.f32 %v514_v52 }
 0x4f8   :  { %s790_s23 = spop %789 }
 0x4f9   :  { %v589_v53 = vstv %s790_s23 }
 0x4fa   :  { %v825_v54 = vpop.eup %824  ;;  %v590_v56 = vmul.f32 0.0625, %v589_v53 }
 0x4fb   :  { %v516_v57 = vmul.f32 %v825_v54, %v501_v55 }
 0x4fc   :  { %v593_v58 = vsel %vm592_vm12, %v590_v56, 0.0 }
 0x4fd   :  { %v594_v59 = vsel %vm591_vm13, %v516_v57, %v593_v58 }
 0x4fe   :  { %595 = vst [vmem:[%s1132_s4] sm:$0x1] %v594_v59 }

</bundles_post_ra>
